<compile_context>
chip_gen: v7x
topology: tpu7x:2x2x1
jax: 0.10.0
libtpu: 0.0.40
codegen_flags: <defaults>
</compile_context>

<pallas_src>
import functools

import jax
import jax.numpy as jnp
from jax import lax
from jax.experimental import pallas as pl
from jax.experimental.pallas import tpu as pltpu


def _vmem_capacity_bytes():
    """Best-effort physical VMEM query; conservative 64 MiB fallback."""
    try:
        info = pltpu.get_tpu_info()
        cap = getattr(info, "vmem_capacity_bytes", None)
        if cap:
            return int(cap)
    except Exception:
        pass
    return 64 * 1024 * 1024


def _adaln_mod_kernel(c_real, scale_ref, shift_ref, x_ref, o_ref):
    # scale_ref/shift_ref: (1, C_pad) f32, scale already has +1 folded in.
    # x_ref/o_ref        : (TL, C_pad) tile of tokens (batch dim squeezed away).
    x = x_ref[...].astype(jnp.float32)                       # (TL, C_pad)
    c_pad = x.shape[-1]
    inv_c = 1.0 / c_real

    # Two-pass mean / variance (biased, like torch LayerNorm). Padded lanes are
    # zero on input, so the sum for the mean is already correct; mask them for
    # the centered second pass.
    mean = jnp.sum(x, axis=-1, keepdims=True) * inv_c
    d = x - mean
    if c_pad != c_real:
        mask = (lax.broadcasted_iota(jnp.int32, x.shape, 1) < c_real).astype(jnp.float32)
        d = d * mask
    var = jnp.sum(d * d, axis=-1, keepdims=True) * inv_c
    xn = (x - mean) * lax.rsqrt(var + 1e-5)

    o_ref[...] = (xn * scale_ref[...] + shift_ref[...]).astype(o_ref.dtype)


def adaln_before_head(x_BLC, cond_BD, w_D2C, b_2C, *, tl=None):
    B, L, C = x_BLC.shape
    D = cond_BD.shape[-1]
    assert w_D2C.shape == (D, 2 * C)
    assert b_2C.shape == (2 * C,)

    # --- hoisted SiLU + Linear (one XLA matmul; W never enters VMEM) ---
    cond_f32 = cond_BD.astype(jnp.float32)
    silu = cond_f32 * jax.nn.sigmoid(cond_f32)
    ss = silu @ w_D2C.astype(jnp.float32) + b_2C.astype(jnp.float32)   # (B, 2C)
    scale1 = ss[:, :C] + 1.0                                           # fold "+1" here
    shift = ss[:, C:]

    # --- lane-dense last dim: pad C up to a multiple of 128 if needed ---
    c_pad = -(-C // 128) * 128
    if c_pad != C:
        x_in = jnp.pad(x_BLC, ((0, 0), (0, 0), (0, c_pad - C)))
        scale1 = jnp.pad(scale1, ((0, 0), (0, c_pad - C)))
        shift = jnp.pad(shift, ((0, 0), (0, c_pad - C)))
    else:
        x_in = x_BLC
    scale1 = scale1.reshape(B, 1, c_pad)
    shift = shift.reshape(B, 1, c_pad)

    itemsize = x_in.dtype.itemsize

    # --- per-generation VMEM budget and L-tile sizing (no arbitrary row cap) ---
    cap = _vmem_capacity_bytes()
    if cap >= 100 * 1024 * 1024:                 # v5e / v6e: 128 MiB physical
        vmem_limit = 100 * 1024 * 1024
    else:                                        # v7x: 64 MiB per TensorCore
        vmem_limit = min(cap - 8 * 1024 * 1024, 52 * 1024 * 1024)
    headroom = 4 * 1024 * 1024
    if tl is None:
        # 2x double-buffered (x + out) blocks in input dtype + ~2 f32 tile temporaries.
        per_row = c_pad * (4 * itemsize + 2 * 4)
        tl = max(8, ((vmem_limit - headroom) // per_row) // 8 * 8)
    tl = tl if tl < L else L                     # full extent for small L

    grid = (pl.cdiv(L, tl), B)                   # L-tiles leading: shards across v7x's 2 TCs

    out_pad = pl.pallas_call(
        functools.partial(_adaln_mod_kernel, C),
        out_shape=jax.ShapeDtypeStruct((B, L, c_pad), x_BLC.dtype),
        grid_spec=pltpu.PrefetchScalarGridSpec(
            num_scalar_prefetch=0,
            grid=grid,
            in_specs=[
                pl.BlockSpec((pl.Squeezed(), 1, c_pad), lambda l, b: (b, 0, 0)),   # scale (+1 folded)
                pl.BlockSpec((pl.Squeezed(), 1, c_pad), lambda l, b: (b, 0, 0)),   # shift
                pl.BlockSpec((pl.Squeezed(), tl, c_pad), lambda l, b: (b, l, 0)),  # x tile
            ],
            out_specs=pl.BlockSpec((pl.Squeezed(), tl, c_pad), lambda l, b: (b, l, 0)),
        ),
        compiler_params=pltpu.CompilerParams(
            dimension_semantics=("parallel", "parallel"),
            vmem_limit_bytes=int(vmem_limit),
        ),
    )(scale1, shift, x_in)

    return out_pad[:, :, :C] if c_pad != C else out_pad


def adaln_before_head_ref(x_BLC, cond_BD, w_D2C, b_2C):
    # Pure-JAX reference matching the PyTorch forward.
    B, L, C = x_BLC.shape
    silu = cond_BD * jax.nn.sigmoid(cond_BD)
    ss = silu @ w_D2C + b_2C                       # (B, 2C)
    scale = ss[:, :C][:, None, :]                  # (B, 1, C)
    shift = ss[:, C:][:, None, :]
    mean = jnp.mean(x_BLC, axis=-1, keepdims=True)
    var = jnp.mean((x_BLC - mean) ** 2, axis=-1, keepdims=True)
    xn = (x_BLC - mean) * lax.rsqrt(var + 1e-5)
    return xn * (scale + 1.0) + shift


if __name__ == "__main__":
    B, L, C, D = 2, 8, 32, 16

    key = jax.random.PRNGKey(0)
    kx, kc, kw, kb = jax.random.split(key, 4)

    x_BLC = jax.random.normal(kx, (B, L, C), dtype=jnp.float32)
    cond_BD = jax.random.normal(kc, (B, D), dtype=jnp.float32)
    # nn.Linear(D, 2C) params (weight stored as (D, 2C) for the silu(cond) @ W layout).
    w_D2C = jax.random.normal(kw, (D, 2 * C), dtype=jnp.float32) * (1.0 / jnp.sqrt(D))
    b_2C = jax.random.normal(kb, (2 * C,), dtype=jnp.float32) * 0.02

    out = adaln_before_head(x_BLC, cond_BD, w_D2C, b_2C)
    out = jax.block_until_ready(out)

    ref = adaln_before_head_ref(x_BLC, cond_BD, w_D2C, b_2C)
    assert out.shape == (B, L, C)
    assert jnp.allclose(out, ref, atol=1e-4, rtol=1e-4), "mismatch vs reference"

    print("KERNEL_OK")
</pallas_src>

<mosaic_0001>
module attributes {stable_mosaic.version = 11 : i64} {
  func.func @_adaln_mod_kernel(%arg0: i32, %arg1: i32, %arg2: memref<1x1x128xf32, #tpu.memory_space<vmem>>, %arg3: memref<1x1x128xf32, #tpu.memory_space<vmem>>, %arg4: memref<1x8x128xf32, #tpu.memory_space<vmem>>, %arg5: memref<1x8x128xf32, #tpu.memory_space<vmem>>) attributes {dimension_semantics = [#tpu.dimension_semantics<parallel>, #tpu.dimension_semantics<parallel>], iteration_bounds = array<i64: 1, 2>, scalar_prefetch = 0 : i64, scratch_operands = 0 : i64, tpu.core_type = #tpu.core_type<tc>, window_params = [{transform_indices = @transform_0, window_bounds = array<i64: 1, 1, 128>}, {transform_indices = @transform_1, window_bounds = array<i64: 1, 1, 128>}, {transform_indices = @transform_2, window_bounds = array<i64: 1, 8, 128>}, {transform_indices = @transform_3, window_bounds = array<i64: 1, 8, 128>}]} {
    %c0 = arith.constant 0 : index
    %c0_0 = arith.constant 0 : index
    %c0_1 = arith.constant 0 : index
    %0 = vector.load %arg4[%c0, %c0_0, %c0_1] : memref<1x8x128xf32, #tpu.memory_space<vmem>>, vector<1x8x128xf32>
    %1 = vector.shape_cast %0 : vector<1x8x128xf32> to vector<8x128xf32>
    %cst = arith.constant dense<0.000000e+00> : vector<8xf32>
    %2 = vector.multi_reduction <add>, %1, %cst [1] : vector<8x128xf32> to vector<8xf32>
    %3 = vector.shape_cast %2 : vector<8xf32> to vector<8x1xf32>
    %cst_2 = arith.constant 3.125000e-02 : f32
    %4 = vector.broadcast %cst_2 : f32 to vector<8x1xf32>
    %5 = arith.mulf %3, %4 : vector<8x1xf32>
    %6 = vector.broadcast %5 : vector<8x1xf32> to vector<8x128xf32>
    %7 = arith.subf %1, %6 : vector<8x128xf32>
    %8 = tpu.iota {dimensions = array<i32: 1>} : vector<8x128xi32>
    %c32_i32 = arith.constant 32 : i32
    %9 = vector.broadcast %c32_i32 : i32 to vector<8x128xi32>
    %10 = arith.cmpi slt, %8, %9 : vector<8x128xi32>
    %11 = arith.extui %10 : vector<8x128xi1> to vector<8x128xi32>
    %12 = arith.sitofp %11 : vector<8x128xi32> to vector<8x128xf32>
    %13 = arith.mulf %7, %12 : vector<8x128xf32>
    %14 = arith.mulf %13, %13 : vector<8x128xf32>
    %cst_3 = arith.constant dense<0.000000e+00> : vector<8xf32>
    %15 = vector.multi_reduction <add>, %14, %cst_3 [1] : vector<8x128xf32> to vector<8xf32>
    %16 = vector.shape_cast %15 : vector<8xf32> to vector<8x1xf32>
    %cst_4 = arith.constant 3.125000e-02 : f32
    %17 = vector.broadcast %cst_4 : f32 to vector<8x1xf32>
    %18 = arith.mulf %16, %17 : vector<8x1xf32>
    %19 = vector.broadcast %5 : vector<8x1xf32> to vector<8x128xf32>
    %20 = arith.subf %1, %19 : vector<8x128xf32>
    %cst_5 = arith.constant 9.99999974E-6 : f32
    %21 = vector.broadcast %cst_5 : f32 to vector<8x1xf32>
    %22 = arith.addf %18, %21 : vector<8x1xf32>
    %23 = math.rsqrt %22 : vector<8x1xf32>
    %24 = vector.broadcast %23 : vector<8x1xf32> to vector<8x128xf32>
    %25 = arith.mulf %20, %24 : vector<8x128xf32>
    %c0_6 = arith.constant 0 : index
    %c0_7 = arith.constant 0 : index
    %c0_8 = arith.constant 0 : index
    %26 = vector.load %arg2[%c0_6, %c0_7, %c0_8] : memref<1x1x128xf32, #tpu.memory_space<vmem>>, vector<1x1x128xf32>
    %27 = vector.shape_cast %26 : vector<1x1x128xf32> to vector<1x128xf32>
    %28 = vector.broadcast %27 : vector<1x128xf32> to vector<8x128xf32>
    %29 = arith.mulf %25, %28 : vector<8x128xf32>
    %c0_9 = arith.constant 0 : index
    %c0_10 = arith.constant 0 : index
    %c0_11 = arith.constant 0 : index
    %30 = vector.load %arg3[%c0_9, %c0_10, %c0_11] : memref<1x1x128xf32, #tpu.memory_space<vmem>>, vector<1x1x128xf32>
    %31 = vector.shape_cast %30 : vector<1x1x128xf32> to vector<1x128xf32>
    %32 = vector.broadcast %31 : vector<1x128xf32> to vector<8x128xf32>
    %33 = arith.addf %29, %32 : vector<8x128xf32>
    %c0_12 = arith.constant 0 : index
    %c0_13 = arith.constant 0 : index
    %c0_14 = arith.constant 0 : index
    %34 = vector.load %arg5[%c0_12, %c0_13, %c0_14] : memref<1x8x128xf32, #tpu.memory_space<vmem>>, vector<1x8x128xf32>
    %35 = vector.shape_cast %34 : vector<1x8x128xf32> to vector<8x128xf32>
    %36 = vector.shape_cast %33 : vector<8x128xf32> to vector<1x8x128xf32>
    tpu.vector_store %arg5[%c0_12, %c0_13, %c0_14], %36 {strides = array<i32>} : memref<1x8x128xf32, #tpu.memory_space<vmem>>, vector<1x8x128xf32>,
    return
  }
  func.func @transform_0(%arg0: i32, %arg1: i32) -> (i32, i32, i32) {
    %c0_i32 = arith.constant 0 : i32
    %c0_i32_0 = arith.constant 0 : i32
    %c0_i32_1 = arith.constant 0 : i32
    return %arg1, %c0_i32, %c0_i32_0 : i32, i32, i32
  }
  func.func @transform_1(%arg0: i32, %arg1: i32) -> (i32, i32, i32) {
    %c0_i32 = arith.constant 0 : i32
    %c0_i32_0 = arith.constant 0 : i32
    %c0_i32_1 = arith.constant 0 : i32
    return %arg1, %c0_i32, %c0_i32_0 : i32, i32, i32
  }
  func.func @transform_2(%arg0: i32, %arg1: i32) -> (i32, i32, i32) {
    %c0_i32 = arith.constant 0 : i32
    %c0_i32_0 = arith.constant 0 : i32
    return %arg1, %arg0, %c0_i32 : i32, i32, i32
  }
  func.func @transform_3(%arg0: i32, %arg1: i32) -> (i32, i32, i32) {
    %c0_i32 = arith.constant 0 : i32
    %c0_i32_0 = arith.constant 0 : i32
    return %arg1, %arg0, %c0_i32 : i32, i32, i32
  }
}

</mosaic_0001>

<bundles_post_ra>
// kernel: tpu_custom_call.1
= control target key start
LH: loop header
LB: loop body
LE: loop exit
PB: predicated region body
PF: predicated region fallthrough
CT: control target
= control target key end

     0   :  { %8 = vsyncpa [#allocation3], 0  ;;  %s895_s0 = inlined_call_operand.hbm [shape: f32[2,1,128], index: 0, kind: input, shape index: {}]   ;;  %s896_s1 = inlined_call_operand.vmem [shape: f32[2,1,128], index: 1, kind: input, shape index: {}]   ;;  %s897_s2 = inlined_call_operand.hbm [shape: f32[2,8,128], index: 2, kind: input, shape index: {}]   ;;  %s898_s3 = inlined_call_operand.hbm [shape: f32[2,8,128], index: 3, kind: output, shape index: {}]  }
   0x1   :  { %10 = vsyncpa [#allocation3 + $0x1], 0 }
   0x2   :  { %11 = vsyncpa [#allocation6], 0 }
   0x3   :  { %13 = vsyncpa [#allocation6 + $0x1], 0 }
   0x4   :  { %14 = vsyncpa [#allocation4], 0 }
   0x5   :  { %16 = vsyncpa [#allocation4 + $0x1], 0  ;;  %s669_s12 = smov 0   ;;  %s671_s13 = smov 0  }
   0x6   :  { %s673_s14 = smov 0   ;;  %s675_s15 = smov 0  }
   0x7   :  { %s677_s16 = smov 0   ;;  %s679_s17 = smov 0  }
   0x8 LB: > { %s410_s18 = sadd.s32 4294967295, %s643_s17   ;;  %s411_s19 = sadd.s32 4294967294, %s643_s17   ;;  %s643_s17 = sphi %s679_s17, %s22_s17   ;;  %s639_s16 = sphi %s677_s16, %s918_s16   ;;  %s635_s15 = sphi %s675_s15, %s917_s15   ;;  %s631_s14 = sphi %s673_s14, %s916_s14   ;;  %s627_s13 = sphi %s671_s13, %s915_s13   ;;  %s623_s12 = sphi %s669_s12, %s914_s12  }
   0x9   : > { %s31_s20 = sadd.s32 1, %s639_s16  ;;  %s41_s21 = sadd.s32 1, %s631_s14 }
   0xa   : > { %p32_p0 = scmp.ge.s32.totalorder %s31_s20, 2  ;;  %p48_p1 = scmp.ne.s32.totalorder %s631_s14, %s627_s13 }
   0xb   : > { %p49_p2 = scmp.eq.s32.totalorder %s643_s17, 0  ;;  %p54_p3 = scmp.ne.s32.totalorder %s627_s13, %s623_s12 }
   0xc   : > { %s920_s20 = smov (%p32_p0, %s31_s20), 0  ;;  %p55_p5 = scmp.eq.s32.totalorder %s410_s18, 0 }
   0xd   : > { %p710_p4 = por %p49_p2, %p48_p1  ;;  %s38_s23 = ssub.s32 %s639_s16, %s920_s20 }
   0xe   : > { %p134_p6 = scmp.eq.s32.totalorder %s410_s18, 1  ;;  %p39_p7 = scmp.eq.s32.totalorder %s38_s23, 0 }
   0xf   : > { %p716_p8 = por %p55_p5, %p54_p3  ;;  %p140_p10 = scmp.eq.s32.totalorder %s411_s19, 1 }
  0x10   : > { %p720_p9 = por %p134_p6, %p48_p1  ;;  %p444_p13 = scmp.lt.s32.totalorder %s643_s17, 2 }
  0x11   : > { %s902_s24 = scalar_select %p716_p8, 1, 0 }
  0x12   : > { %s903_s25 = scalar_select %p720_p9, 1, 0 }
  0x13   : > { %s725_s26 = scalar_select %p39_p7, %s631_s14, %s41_s21  }
  0x14   : > { %p727_p11 = por %p140_p10, %p54_p3  ;;  %s734_s28 = sand.u32 1, %s631_s14  }
  0x15   : > { %s414_s29 = sshll.u32 %s639_s16, 4  ;;  %s163_s30 = scalar_lea.vmem [#allocation2], %s734_s28 }
  0x16   : > { %s904_s27 = scalar_select %p727_p11, 1, 0 }
  0x17   : > { %s170_s4 = sshll.u32 %s163_s30, 4  ;;  %s741_s7 = scalar_lea.hbm %s895_s0, %s414_s29  ;;  %s743_s4 = int_to_ptr.vmem [resolvable:$true] %s170_s4 }
  0x18   : > { %p747_p0 = pnand %p444_p13, %p710_p4  ;;  %s415_s9 = sshll.u32 %s734_s28, 3 }
  0x19   : > { %s161_s10 = scalar_lea.sflag [#allocation3], %s734_s28  ;;  %s497_s11 = scalar_lea.hbm %s741_s7, 16 }
  0x1a   : > { %p498_p3 = scmp.ne.s32.totalorder %s741_s7, %s497_s11  ;;  %p499_p5 = pneg %p747_p0 }
  0x1b   : > { %s502_s21 = scalar_lea.hbm %s895_s0, 32  ;;  %p503_p4 = scmp.lt.u32.totalorder %s741_s7, %s895_s0 }
  0x1c   : > { %p500_p6 = pnand %p499_p5, %p498_p3  ;;  %p504_p10 = scmp.lt.u32.totalorder %s502_s21, %s497_s11 }
  0x1d   : > { %p506_p12 = scmp.lt.u32.totalorder %s497_s11, %s741_s7 }
  0x1e   : > { %p501_p7 = pneg %p500_p6  ;;  %p505_p13 = por %p504_p10, %p503_p4 }
  0x20   : > { %p507_p1 = por %p506_p12, %p505_p13 }
  0x22   : > { %p508_p2 = pnand %p507_p1, %p501_p7 }
  0x24   : > { %511 = shalt.err (!%p508_p2)
}
  0x25   : > { %s512_s29 = scalar_lea.vmem %s743_s4, 16  ;;  %s645_s30 = smov [#allocation2]  }
  0x26   : > { %p513_p3 = scmp.ne.s32.totalorder %s743_s4, %s512_s29  ;;  %s517_s5 = sshll.u32 %s645_s30, 4  ;;  %s518_s5 = int_to_ptr.vmem [resolvable:$false] %s517_s5 }
  0x27   : > { %s519_s6 = scalar_lea.vmem %s518_s5, 32  ;;  %p520_p9 = scmp.lt.s32.totalorder %s743_s4, %s518_s5 }
  0x28   : > { %p515_p6 = pnand %p513_p3, %p499_p5  ;;  %p521_p4 = scmp.lt.s32.totalorder %s519_s6, %s512_s29 }
  0x2a   : > { %p516_p11 = pneg %p515_p6  ;;  %p522_p10 = por %p521_p4, %p520_p9 }
  0x2c   : > { %p523_p12 = pnand %p522_p10, %p516_p11 }
  0x2e   : > { %526 = shalt.err (!%p523_p12)
}
  0x2f   : > { %436 = dma.hbm_to_vmem [thread:$0]  (!%p747_p0), %s741_s7, 16, %s743_s4, %s161_s10  }
  0x30   : > { %p906_p1 = scmp.lt.s32.totalorder %s643_s17, 3  ;;  %p907_p2 = scmp.ge.s32.totalorder %s643_s17, 1 }
  0x31   : > { %s416_s18 = sshll.u32 %s639_s16, 7  ;;  %s187_s19 = scalar_lea.vmem [#allocation5], %s415_s9 }
  0x32   : > { %p784_p7 = pnand %p907_p2, %p906_p1  ;;  %s195_s21 = sshll.u32 %s187_s19, 4  ;;  %s196_s21 = int_to_ptr.vmem [resolvable:$true] %s195_s21 }
  0x33   : > { %s794_s29 = scalar_lea.hbm %s897_s2, %s416_s18  ;;  %s184_s4 = scalar_lea.sflag [#allocation6], %s734_s28 }
  0x34   : > { %s908_s11 = scalar_select %p784_p7, 1, 0 }
  0x35   : > { %s527_s7 = scalar_lea.hbm %s794_s29, 128  ;;  %s532_s30 = scalar_lea.hbm %s897_s2, 256 }
  0x36   : > { %p528_p9 = scmp.ne.s32.totalorder %s794_s29, %s527_s7  ;;  %p533_p3 = scmp.lt.u32.totalorder %s794_s29, %s897_s2 }
  0x37   : > { %p534_p6 = scmp.lt.u32.totalorder %s532_s30, %s527_s7  ;;  %p536_p10 = scmp.lt.u32.totalorder %s527_s7, %s794_s29 }
  0x38   : > { %p530_p11 = pnand %p528_p9, %p499_p5 }
  0x39   : > { %p535_p4 = por %p534_p6, %p533_p3 }
  0x3a   : > { %p531_p13 = pneg %p530_p11 }
  0x3b   : > { %p537_p12 = por %p536_p10, %p535_p4 }
  0x3d   : > { %p538_p1 = pnand %p537_p12, %p531_p13 }
  0x3f   : > { %541 = shalt.err (!%p538_p1)
}
  0x40   : > { %s542_s28 = scalar_lea.vmem %s196_s21, 128  ;;  %s646_s18 = smov [#allocation5]  }
  0x41   : > { %p543_p2 = scmp.ne.s32.totalorder %s196_s21, %s542_s28  ;;  %s547_s19 = sshll.u32 %s646_s18, 4  ;;  %s548_s19 = int_to_ptr.vmem [resolvable:$false] %s547_s19 }
  0x42   : > { %s549_s22 = scalar_lea.vmem %s548_s19, 256  ;;  %p550_p8 = scmp.lt.s32.totalorder %s196_s21, %s548_s19 }
  0x43   : > { %p545_p9 = pnand %p543_p2, %p499_p5  ;;  %p551_p7 = scmp.lt.s32.totalorder %s549_s22, %s542_s28 }
  0x45   : > { %p546_p11 = pneg %p545_p9  ;;  %p552_p3 = por %p551_p7, %p550_p8 }
  0x47   : > { %p553_p6 = pnand %p552_p3, %p546_p11 }
  0x49   : > { %556 = shalt.err (!%p553_p6)
}
  0x4a   : > { %439 = dma.hbm_to_vmem [thread:$0]  (!%p747_p0), %s794_s29, 128, %s196_s21, %s184_s4  }
  0x4b   : > { %p909_p13 = scmp.ne.s32.totalorder %s908_s11, 0 }
  0x4c   : > { %s819_s23 = sand.u32 (!%p909_p13), 1, %s627_s13   ;;  %p910_p5 = scmp.ne.s32.totalorder (!%p909_p13), %s902_s24, 0 }
  0x4d   : > { %204 = sbr.rel (%p909_p13) target bundleno = 416 (0x1a0), region = 32  ;;  %s207_s7 = scalar_lea.sflag (!%p909_p13), [#allocation3], %s819_s23 }
  0x4e   : > { %s209_s10 = scalar_lea.vmem (!%p909_p13), [#allocation2], %s819_s23 }
  0x54   : > { %610 = dma.done.wait (%p910_p5), %s207_s7, 16  }
  0x55   : > { %612 = vsyncadd (%p910_p5), %s207_s7, 4294967280  ;;  %s418_s8 = sshll.u32 %s819_s23, 3  ;;  %s215_s11 = scalar_lea.sflag [#allocation6], %s819_s23 }
  0x56   : > { %s218_s21 = scalar_lea.vmem [#allocation5], %s418_s8 }
  0x57   : > { %614 = dma.done.wait (%p910_p5), %s215_s11, 128  }
  0x58   : > { %616 = vsyncadd (%p910_p5), %s215_s11, 4294967168  ;;  %v251_v0 = vld [vmem:[%s218_s21] sm:$0xff]  ;;  %v256_v1 = vlaneseq  ;;  %v647_v5 = vmov 0.0   ;;  %p248_p8 = scmp.lt.s32.totalorder %s635_s15, 1  ;;  %v421_v14 = vld [vmem:[%s209_s10] ss:$0 sm:$0xff] }
  0x59   : > { %252 = vadd.xlane.f32.xlu0 %v251_v0  ;;  %s424_s30 = sshll.u32 %s635_s15, 7  ;;  %s247_s5 = scalar_lea.vmem [#allocation7], %s418_s8 }
  0x5a   : > { %v257_v2 = vand.u32 127, %v256_v1  ;;  %s249_s24 = scalar_select %p248_p8, %s635_s15, 1 }
  0x5b   : > { %s301_s6 = sshll.u32 %s247_s5, 4  ;;  %s846_s19 = scalar_lea.hbm %s898_s3, %s424_s30  ;;  %s848_s6 = int_to_ptr.vmem [resolvable:$true] %s301_s6 }
  0x5c   : > { %vm258_vm0 = vcmp.lt.s32.totalorder %v257_v2, 32  ;;  %s250_s9 = scalar_lea.vmem %s896_s1, %s249_s24  ;;  %s287_s22 = scalar_lea.sflag [#allocation4], %s819_s23 }
  0x5d   : > { %v420_v6 = vsel %vm258_vm0, 1.0, %v647_v5  ;;  %v422_v16 = vld [vmem:[%s250_s9] ss:$0 sm:$0xff]  ;;  %s557_s7 = scalar_lea.vmem %s848_s6, 128  ;;  %p911_p7 = scmp.ne.s32.totalorder %s903_s25, 0 }
  0x5e   : > { %p558_p0 = scmp.ne.s32.totalorder %s848_s6, %s557_s7  ;;  %s648_s15 = smov [#allocation7]  }
  0x5f   : > { %s561_s10 = sshll.u32 %s648_s15, 4  ;;  %s562_s10 = int_to_ptr.vmem [resolvable:$false] %s561_s10 }
  0x60   : > { %p559_p4 = pnand %p558_p0, %p911_p7  ;;  %s563_s8 = scalar_lea.vmem %s562_s10, 256 }
  0x61   : > { %p564_p12 = scmp.lt.s32.totalorder %s848_s6, %s562_s10  ;;  %p565_p1 = scmp.lt.s32.totalorder %s563_s8, %s557_s7 }
  0x62   : > { %p560_p10 = pneg %p559_p4 }
  0x63   : > { %p566_p2 = por %p565_p1, %p564_p12 }
  0x65   : > { %p567_p9 = pnand %p566_p2, %p560_p10 }
  0xe6   : > { %v253_v3 = vpop.xlane.xlu0 %252 }
  0xe7   : > { %v254_v4 = vmul.f32 0.03125, %v253_v3 }
  0xe9   : > { %v255_v7 = vsub.f32 %v251_v0, %v254_v4 }
  0xeb   : > { %v261_v8 = vmul.f32 %v420_v6, %v255_v7 }
  0xed   : > { %v262_v9 = vmul.f32 %v261_v8, %v261_v8 }
  0xef   : > { %263 = vadd.xlane.f32.xlu0 %v262_v9 }
 0x17c   : > { %v264_v10 = vpop.xlane.xlu0 %263 }
 0x17d   : > { %v265_v11 = vmul.f32 0.03125, %v264_v10 }
 0x17f   : > { %v266_v12 = vadd.f32 1e-05, %v265_v11 }
 0x181   : > { %495 = vrsqrt.f32 %v266_v12 }
 0x18b   : > { %v496_v13 = vpop.eup %495 }
 0x18c   : > { %v268_v15 = vmul.f32 %v496_v13, %v255_v7 }
 0x18e   : > { %v276_v17 = vmul.f32 %v421_v14, %v268_v15 }
 0x190   : > { %v284_v18 = vadd.f32 %v422_v16, %v276_v17 }
 0x192   : > { %285 = vst [vmem:[%s247_s5] sm:$0xff] %v284_v18 }
 0x193   : > { %570 = shalt.err (!%p567_p9)
}
 0x194   : > { %s571_s23 = scalar_lea.hbm %s846_s19, 128  ;;  %s575_s24 = scalar_lea.hbm %s898_s3, 256 }
 0x195   : > { %p572_p11 = scmp.ne.s32.totalorder %s846_s19, %s571_s23  ;;  %p576_p13 = scmp.lt.u32.totalorder %s846_s19, %s898_s3 }
 0x196   : > { %p577_p5 = scmp.lt.u32.totalorder %s575_s24, %s571_s23  ;;  %p579_p0 = scmp.lt.u32.totalorder %s571_s23, %s846_s19 }
 0x197   : > { %p573_p3 = pnand %p572_p11, %p911_p7 }
 0x198   : > { %p578_p8 = por %p577_p5, %p576_p13 }
 0x199   : > { %p574_p6 = pneg %p573_p3 }
 0x19a   : > { %p580_p4 = por %p579_p0, %p578_p8 }
 0x19c   : > { %p581_p10 = pnand %p580_p4, %p574_p6 }
 0x19e   : > { %584 = shalt.err (!%p581_p10)
}
 0x19f   : > { %431 = dma.vmem_to_hbm [thread:$0]  (%p911_p7), %s848_s6, 128, %s846_s19, %s287_s22  }
 0x1a0 PF: > { %s313_s9 = sand.u32 1, %s623_s12   ;;  %p912_p12 = scmp.ne.s32.totalorder %s904_s27, 0 }
 0x1a1   : > { %p913_p1 = scmp.ge.s32.totalorder %s643_s17, 2  ;;  %s314_s30 = scalar_lea.sflag [#allocation4], %s313_s9 }
 0x1a3   : > { %p441_p2 = pnand %p913_p1, %p912_p12 }
 0x1a5   : > { %618 = dma.done.wait (!%p441_p2), %s314_s30, 128  }
 0x1a6   : > { %620 = vsyncadd (!%p441_p2), %s314_s30, 4294967168  ;;  %s22_s17 = sadd.s32 1, %s643_s17   ;;  %s914_s12 = smov %s627_s13 }
 0x1a7   : > { %p19_p9 = scmp.ge.s32.totalorder %s22_s17, 4   ;;  %s915_s13 = smov %s631_s14 }
 0x1a8   : > { %s916_s14 = smov %s725_s26  ;;  %s917_s15 = smov %s639_s16 }
 0x1a9   : > { %s918_s16 = smov %s920_s20  ;;  %21 = sbr.rel (!%p19_p9) target bundleno = 8 (0x8), region = 93 }
 0x1b0   :  { %319 = vsyncpa [#allocation3], 1 }
 0x1b1   :  { %321 = vsyncpa [#allocation3 + $0x1], 1 }
 0x1b2   :  { %322 = vsyncpa [#allocation6], 1 }
 0x1b3   :  { %324 = vsyncpa [#allocation6 + $0x1], 1 }
 0x1b4   :  { %325 = vsyncpa [#allocation4], 1 }
 0x1b5   :  { %327 = vsyncpa [#allocation4 + $0x1], 1 }

</bundles_post_ra>
